<compile_context>
chip_gen: v6e
topology: v6e:2x2x1
jax: 0.10.0
libtpu: 0.0.40
codegen_flags: <defaults>
</compile_context>

<pallas_src>
import jax
import jax.numpy as jnp
from jax.experimental import pallas as pl
from jax.experimental.pallas import tpu as pltpu


def rnn_kernel(x_ref, wih0_ref, whh0_ref, b0_ref,
               wih1_ref, whh1_ref, b1_ref,
               wfc_ref, bfc_ref,
               out_ref):
    T, B, _ = x_ref.shape
    H = whh0_ref.shape[0]
    C = out_ref.shape[1]

    # Hoist weight loads out of the unrolled loop (~20 live vregs total).
    wih0 = wih0_ref[...]     # (I, H)
    whh0 = whh0_ref[...]     # (H, H)
    b0 = b0_ref[...]         # (1, H)
    wih1 = wih1_ref[...]     # (H, H)
    whh1 = whh1_ref[...]     # (H, H)
    b1 = b1_ref[...]         # (1, H)

    h1 = jnp.zeros((B, H), jnp.float32)
    h2 = jnp.zeros((B, H), jnp.float32)
    acc = jnp.zeros((B, C), jnp.float32)

    # Fully unrolled time loop: only the h @ Whh -> tanh chain is serial; the
    # x_t @ Wih and FC dots are independent and fill the MXU/VPU slack.
    for t in range(T):
        x_t = x_ref[t]       # (B, I), static leading index -> cheap VMEM load

        # Layer 0: h1_t = tanh(x_t @ Wih0^T + h1_{t-1} @ Whh0^T + (b_ih0+b_hh0))
        h1 = jnp.tanh(
            jnp.dot(x_t, wih0, preferred_element_type=jnp.float32)
            + jnp.dot(h1, whh0, preferred_element_type=jnp.float32)
            + b0)

        # Layer 1: h2_t = tanh(h1_t @ Wih1^T + h2_{t-1} @ Whh1^T + (b_ih1+b_hh1))
        h2 = jnp.tanh(
            jnp.dot(h1, wih1, preferred_element_type=jnp.float32)
            + jnp.dot(h2, whh1, preferred_element_type=jnp.float32)
            + b1)

        # FC on the flattened sequence output, folded per timestep and
        # accumulated in registers:  logits = b_fc + sum_t h2_t @ Wfc_t
        acc = acc + jnp.dot(h2, wfc_ref[t], preferred_element_type=jnp.float32)

    out_ref[...] = (acc + bfc_ref[...]).astype(out_ref.dtype)


@jax.jit
def rnn_forward(x, params):
    """x: (B, T, I) batch_first, like the PyTorch module. Returns (B, C) logits."""
    B, T, I = x.shape
    wih0, whh0, bih0, bhh0, wih1, whh1, bih1, bhh1, wfc, bfc = params
    H = whh0.shape[0]
    C = wfc.shape[0]

    # Glue: layout prep in plain JAX (outside the kernel).
    x_tm = jnp.transpose(x, (1, 0, 2))      # (T, B, I) time-major
    wih0_t = wih0.T                         # (I, H)
    whh0_t = whh0.T                         # (H, H)
    b0 = (bih0 + bhh0).reshape(1, H)
    wih1_t = wih1.T                         # (H, H)
    whh1_t = whh1.T                         # (H, H)
    b1 = (bih1 + bhh1).reshape(1, H)
    wfc_t = wfc.T.reshape(T, H, C)          # per-timestep FC weight slabs
    bfc_r = bfc.reshape(1, C)

    vmem = pltpu.MemorySpace.VMEM
    return pl.pallas_call(
        rnn_kernel,
        out_shape=jax.ShapeDtypeStruct((B, C), jnp.float32),
        in_specs=[pl.BlockSpec(memory_space=vmem)] * 9,   # full arrays in VMEM
        out_specs=pl.BlockSpec(memory_space=vmem),
    )(x_tm, wih0_t, whh0_t, b0, wih1_t, whh1_t, b1, wfc_t, bfc_r)


def rnn_reference(x, params):
    """Pure-JAX reference matching torch.nn.RNN(batch_first, tanh) + Linear."""
    wih0, whh0, bih0, bhh0, wih1, whh1, bih1, bhh1, wfc, bfc = params
    B, T, I = x.shape
    H = whh0.shape[0]
    h1 = jnp.zeros((B, H), jnp.float32)
    h2 = jnp.zeros((B, H), jnp.float32)
    outs = []
    for t in range(T):
        h1 = jnp.tanh(x[:, t, :] @ wih0.T + bih0 + h1 @ whh0.T + bhh0)
        h2 = jnp.tanh(h1 @ wih1.T + bih1 + h2 @ whh1.T + bhh1)
        outs.append(h2)
    out = jnp.stack(outs, axis=1).reshape(B, T * H)
    return out @ wfc.T + bfc


def init_params(key, input_size, hidden_size, seq_len, num_classes):
    """Deterministic uniform(-1/sqrt(H), 1/sqrt(H)) init, matching PyTorch shapes."""
    H, I, T, C = hidden_size, input_size, seq_len, num_classes
    ks = jax.random.split(key, 10)
    s = 1.0 / jnp.sqrt(H)
    u = lambda k, shape: jax.random.uniform(k, shape, jnp.float32, -s, s)
    return (
        u(ks[0], (H, I)),      # weight_ih_l0
        u(ks[1], (H, H)),      # weight_hh_l0
        u(ks[2], (H,)),        # bias_ih_l0
        u(ks[3], (H,)),        # bias_hh_l0
        u(ks[4], (H, H)),      # weight_ih_l1
        u(ks[5], (H, H)),      # weight_hh_l1
        u(ks[6], (H,)),        # bias_ih_l1
        u(ks[7], (H,)),        # bias_hh_l1
        u(ks[8], (C, H * T)),  # fc.weight
        u(ks[9], (C,)),        # fc.bias
    )


if __name__ == "__main__":
    # Small shapes consistent with the module's forward (scaled-down hidden/seq).
    B, T, I, H, C = 2, 8, 28, 32, 10

    key = jax.random.PRNGKey(0)
    kx, kp = jax.random.split(key)
    x = jax.random.normal(kx, (B, T, I), jnp.float32)
    params = init_params(kp, I, H, T, C)

    logits = jax.block_until_ready(rnn_forward(x, params))
    ref = rnn_reference(x, params)

    assert logits.shape == (B, C)
    assert jnp.allclose(logits, ref, atol=1e-4, rtol=1e-4), (
        f"max abs err {jnp.max(jnp.abs(logits - ref))}")
    print("KERNEL_OK")
</pallas_src>

<mosaic_0001>
module attributes {stable_mosaic.version = 11 : i64} {
  func.func @rnn_kernel(%arg0: memref<8x2x28xf32, #tpu.memory_space<vmem>>, %arg1: memref<28x32xf32, #tpu.memory_space<vmem>>, %arg2: memref<32x32xf32, #tpu.memory_space<vmem>>, %arg3: memref<1x32xf32, #tpu.memory_space<vmem>>, %arg4: memref<32x32xf32, #tpu.memory_space<vmem>>, %arg5: memref<32x32xf32, #tpu.memory_space<vmem>>, %arg6: memref<1x32xf32, #tpu.memory_space<vmem>>, %arg7: memref<8x32x10xf32, #tpu.memory_space<vmem>>, %arg8: memref<1x10xf32, #tpu.memory_space<vmem>>, %arg9: memref<2x10xf32, #tpu.memory_space<vmem>>) attributes {dimension_semantics = [], scalar_prefetch = 0 : i64, scratch_operands = 0 : i64, tpu.core_type = #tpu.core_type<tc>} {
    %c0 = arith.constant 0 : index
    %c0_0 = arith.constant 0 : index
    %0 = vector.load %arg1[%c0, %c0_0] : memref<28x32xf32, #tpu.memory_space<vmem>>, vector<28x32xf32>
    %c0_1 = arith.constant 0 : index
    %c0_2 = arith.constant 0 : index
    %1 = vector.load %arg2[%c0_1, %c0_2] : memref<32x32xf32, #tpu.memory_space<vmem>>, vector<32x32xf32>
    %c0_3 = arith.constant 0 : index
    %c0_4 = arith.constant 0 : index
    %2 = vector.load %arg3[%c0_3, %c0_4] : memref<1x32xf32, #tpu.memory_space<vmem>>, vector<1x32xf32>
    %c0_5 = arith.constant 0 : index
    %c0_6 = arith.constant 0 : index
    %3 = vector.load %arg4[%c0_5, %c0_6] : memref<32x32xf32, #tpu.memory_space<vmem>>, vector<32x32xf32>
    %c0_7 = arith.constant 0 : index
    %c0_8 = arith.constant 0 : index
    %4 = vector.load %arg5[%c0_7, %c0_8] : memref<32x32xf32, #tpu.memory_space<vmem>>, vector<32x32xf32>
    %c0_9 = arith.constant 0 : index
    %c0_10 = arith.constant 0 : index
    %5 = vector.load %arg6[%c0_9, %c0_10] : memref<1x32xf32, #tpu.memory_space<vmem>>, vector<1x32xf32>
    %cst = arith.constant 0.000000e+00 : f32
    %6 = vector.broadcast %cst : f32 to vector<2x32xf32>
    %cst_11 = arith.constant 0.000000e+00 : f32
    %7 = vector.broadcast %cst_11 : f32 to vector<2x32xf32>
    %cst_12 = arith.constant 0.000000e+00 : f32
    %8 = vector.broadcast %cst_12 : f32 to vector<2x10xf32>
    %c0_13 = arith.constant 0 : index
    %c0_14 = arith.constant 0 : index
    %c0_15 = arith.constant 0 : index
    %9 = vector.load %arg0[%c0_13, %c0_14, %c0_15] : memref<8x2x28xf32, #tpu.memory_space<vmem>>, vector<1x2x28xf32>
    %10 = vector.shape_cast %9 : vector<1x2x28xf32> to vector<2x28xf32>
    %cst_16 = arith.constant dense<0.000000e+00> : vector<2x32xf32>
    %11 = tpu.matmul %10, %0, %cst_16 {dimension_numbers = #tpu.dot_dimension_numbers<[1], [0], [0], [1], [0, 0, 1, 1], [], []>} : vector<2x28xf32>, vector<28x32xf32>, vector<2x32xf32> -> vector<2x32xf32>
    %cst_17 = arith.constant dense<0.000000e+00> : vector<2x32xf32>
    %12 = tpu.matmul %6, %1, %cst_17 {dimension_numbers = #tpu.dot_dimension_numbers<[1], [0], [0], [1], [0, 0, 1, 1], [], []>} : vector<2x32xf32>, vector<32x32xf32>, vector<2x32xf32> -> vector<2x32xf32>
    %13 = arith.addf %11, %12 : vector<2x32xf32>
    %14 = vector.broadcast %2 : vector<1x32xf32> to vector<2x32xf32>
    %15 = arith.addf %13, %14 : vector<2x32xf32>
    %16 = math.tanh %15 : vector<2x32xf32>
    %cst_18 = arith.constant dense<0.000000e+00> : vector<2x32xf32>
    %17 = tpu.matmul %16, %3, %cst_18 {dimension_numbers = #tpu.dot_dimension_numbers<[1], [0], [0], [1], [0, 0, 1, 1], [], []>} : vector<2x32xf32>, vector<32x32xf32>, vector<2x32xf32> -> vector<2x32xf32>
    %cst_19 = arith.constant dense<0.000000e+00> : vector<2x32xf32>
    %18 = tpu.matmul %7, %4, %cst_19 {dimension_numbers = #tpu.dot_dimension_numbers<[1], [0], [0], [1], [0, 0, 1, 1], [], []>} : vector<2x32xf32>, vector<32x32xf32>, vector<2x32xf32> -> vector<2x32xf32>
    %19 = arith.addf %17, %18 : vector<2x32xf32>
    %20 = vector.broadcast %5 : vector<1x32xf32> to vector<2x32xf32>
    %21 = arith.addf %19, %20 : vector<2x32xf32>
    %22 = math.tanh %21 : vector<2x32xf32>
    %c0_20 = arith.constant 0 : index
    %c0_21 = arith.constant 0 : index
    %c0_22 = arith.constant 0 : index
    %23 = vector.load %arg7[%c0_20, %c0_21, %c0_22] : memref<8x32x10xf32, #tpu.memory_space<vmem>>, vector<1x32x10xf32>
    %24 = vector.shape_cast %23 : vector<1x32x10xf32> to vector<32x10xf32>
    %cst_23 = arith.constant dense<0.000000e+00> : vector<2x10xf32>
    %25 = tpu.matmul %22, %24, %cst_23 {dimension_numbers = #tpu.dot_dimension_numbers<[1], [0], [0], [1], [0, 0, 1, 1], [], []>} : vector<2x32xf32>, vector<32x10xf32>, vector<2x10xf32> -> vector<2x10xf32>
    %26 = arith.addf %8, %25 : vector<2x10xf32>
    %c1 = arith.constant 1 : index
    %c0_24 = arith.constant 0 : index
    %c0_25 = arith.constant 0 : index
    %27 = vector.load %arg0[%c1, %c0_24, %c0_25] : memref<8x2x28xf32, #tpu.memory_space<vmem>>, vector<1x2x28xf32>
    %28 = vector.shape_cast %27 : vector<1x2x28xf32> to vector<2x28xf32>
    %cst_26 = arith.constant dense<0.000000e+00> : vector<2x32xf32>
    %29 = tpu.matmul %28, %0, %cst_26 {dimension_numbers = #tpu.dot_dimension_numbers<[1], [0], [0], [1], [0, 0, 1, 1], [], []>} : vector<2x28xf32>, vector<28x32xf32>, vector<2x32xf32> -> vector<2x32xf32>
    %cst_27 = arith.constant dense<0.000000e+00> : vector<2x32xf32>
    %30 = tpu.matmul %16, %1, %cst_27 {dimension_numbers = #tpu.dot_dimension_numbers<[1], [0], [0], [1], [0, 0, 1, 1], [], []>} : vector<2x32xf32>, vector<32x32xf32>, vector<2x32xf32> -> vector<2x32xf32>
    %31 = arith.addf %29, %30 : vector<2x32xf32>
    %32 = vector.broadcast %2 : vector<1x32xf32> to vector<2x32xf32>
    %33 = arith.addf %31, %32 : vector<2x32xf32>
    %34 = math.tanh %33 : vector<2x32xf32>
    %cst_28 = arith.constant dense<0.000000e+00> : vector<2x32xf32>
    %35 = tpu.matmul %34, %3, %cst_28 {dimension_numbers = #tpu.dot_dimension_numbers<[1], [0], [0], [1], [0, 0, 1, 1], [], []>} : vector<2x32xf32>, vector<32x32xf32>, vector<2x32xf32> -> vector<2x32xf32>
    %cst_29 = arith.constant dense<0.000000e+00> : vector<2x32xf32>
    %36 = tpu.matmul %22, %4, %cst_29 {dimension_numbers = #tpu.dot_dimension_numbers<[1], [0], [0], [1], [0, 0, 1, 1], [], []>} : vector<2x32xf32>, vector<32x32xf32>, vector<2x32xf32> -> vector<2x32xf32>
    %37 = arith.addf %35, %36 : vector<2x32xf32>
    %38 = vector.broadcast %5 : vector<1x32xf32> to vector<2x32xf32>
    %39 = arith.addf %37, %38 : vector<2x32xf32>
    %40 = math.tanh %39 : vector<2x32xf32>
    %c1_30 = arith.constant 1 : index
    %c0_31 = arith.constant 0 : index
    %c0_32 = arith.constant 0 : index
    %41 = vector.load %arg7[%c1_30, %c0_31, %c0_32] : memref<8x32x10xf32, #tpu.memory_space<vmem>>, vector<1x32x10xf32>
    %42 = vector.shape_cast %41 : vector<1x32x10xf32> to vector<32x10xf32>
    %cst_33 = arith.constant dense<0.000000e+00> : vector<2x10xf32>
    %43 = tpu.matmul %40, %42, %cst_33 {dimension_numbers = #tpu.dot_dimension_numbers<[1], [0], [0], [1], [0, 0, 1, 1], [], []>} : vector<2x32xf32>, vector<32x10xf32>, vector<2x10xf32> -> vector<2x10xf32>
    %44 = arith.addf %26, %43 : vector<2x10xf32>
    %c2 = arith.constant 2 : index
    %c0_34 = arith.constant 0 : index
    %c0_35 = arith.constant 0 : index
    %45 = vector.load %arg0[%c2, %c0_34, %c0_35] : memref<8x2x28xf32, #tpu.memory_space<vmem>>, vector<1x2x28xf32>
    %46 = vector.shape_cast %45 : vector<1x2x28xf32> to vector<2x28xf32>
    %cst_36 = arith.constant dense<0.000000e+00> : vector<2x32xf32>
    %47 = tpu.matmul %46, %0, %cst_36 {dimension_numbers = #tpu.dot_dimension_numbers<[1], [0], [0], [1], [0, 0, 1, 1], [], []>} : vector<2x28xf32>, vector<28x32xf32>, vector<2x32xf32> -> vector<2x32xf32>
    %cst_37 = arith.constant dense<0.000000e+00> : vector<2x32xf32>
    %48 = tpu.matmul %34, %1, %cst_37 {dimension_numbers = #tpu.dot_dimension_numbers<[1], [0], [0], [1], [0, 0, 1, 1], [], []>} : vector<2x32xf32>, vector<32x32xf32>, vector<2x32xf32> -> vector<2x32xf32>
    %49 = arith.addf %47, %48 : vector<2x32xf32>
    %50 = vector.broadcast %2 : vector<1x32xf32> to vector<2x32xf32>
    %51 = arith.addf %49, %50 : vector<2x32xf32>
    %52 = math.tanh %51 : vector<2x32xf32>
    %cst_38 = arith.constant dense<0.000000e+00> : vector<2x32xf32>
    %53 = tpu.matmul %52, %3, %cst_38 {dimension_numbers = #tpu.dot_dimension_numbers<[1], [0], [0], [1], [0, 0, 1, 1], [], []>} : vector<2x32xf32>, vector<32x32xf32>, vector<2x32xf32> -> vector<2x32xf32>
    %cst_39 = arith.constant dense<0.000000e+00> : vector<2x32xf32>
    %54 = tpu.matmul %40, %4, %cst_39 {dimension_numbers = #tpu.dot_dimension_numbers<[1], [0], [0], [1], [0, 0, 1, 1], [], []>} : vector<2x32xf32>, vector<32x32xf32>, vector<2x32xf32> -> vector<2x32xf32>
    %55 = arith.addf %53, %54 : vector<2x32xf32>
    %56 = vector.broadcast %5 : vector<1x32xf32> to vector<2x32xf32>
    %57 = arith.addf %55, %56 : vector<2x32xf32>
    %58 = math.tanh %57 : vector<2x32xf32>
    %c2_40 = arith.constant 2 : index
    %c0_41 = arith.constant 0 : index
    %c0_42 = arith.constant 0 : index
    %59 = vector.load %arg7[%c2_40, %c0_41, %c0_42] : memref<8x32x10xf32, #tpu.memory_space<vmem>>, vector<1x32x10xf32>
    %60 = vector.shape_cast %59 : vector<1x32x10xf32> to vector<32x10xf32>
    %cst_43 = arith.constant dense<0.000000e+00> : vector<2x10xf32>
    %61 = tpu.matmul %58, %60, %cst_43 {dimension_numbers = #tpu.dot_dimension_numbers<[1], [0], [0], [1], [0, 0, 1, 1], [], []>} : vector<2x32xf32>, vector<32x10xf32>, vector<2x10xf32> -> vector<2x10xf32>
    %62 = arith.addf %44, %61 : vector<2x10xf32>
    %c3 = arith.constant 3 : index
    %c0_44 = arith.constant 0 : index
    %c0_45 = arith.constant 0 : index
    %63 = vector.load %arg0[%c3, %c0_44, %c0_45] : memref<8x2x28xf32, #tpu.memory_space<vmem>>, vector<1x2x28xf32>
    %64 = vector.shape_cast %63 : vector<1x2x28xf32> to vector<2x28xf32>
    %cst_46 = arith.constant dense<0.000000e+00> : vector<2x32xf32>
    %65 = tpu.matmul %64, %0, %cst_46 {dimension_numbers = #tpu.dot_dimension_numbers<[1], [0], [0], [1], [0, 0, 1, 1], [], []>} : vector<2x28xf32>, vector<28x32xf32>, vector<2x32xf32> -> vector<2x32xf32>
    %cst_47 = arith.constant dense<0.000000e+00> : vector<2x32xf32>
    %66 = tpu.matmul %52, %1, %cst_47 {dimension_numbers = #tpu.dot_dimension_numbers<[1], [0], [0], [1], [0, 0, 1, 1], [], []>} : vector<2x32xf32>, vector<32x32xf32>, vector<2x32xf32> -> vector<2x32xf32>
    %67 = arith.addf %65, %66 : vector<2x32xf32>
    %68 = vector.broadcast %2 : vector<1x32xf32> to vector<2x32xf32>
    %69 = arith.addf %67, %68 : vector<2x32xf32>
    %70 = math.tanh %69 : vector<2x32xf32>
    %cst_48 = arith.constant dense<0.000000e+00> : vector<2x32xf32>
    %71 = tpu.matmul %70, %3, %cst_48 {dimension_numbers = #tpu.dot_dimension_numbers<[1], [0], [0], [1], [0, 0, 1, 1], [], []>} : vector<2x32xf32>, vector<32x32xf32>, vector<2x32xf32> -> vector<2x32xf32>
    %cst_49 = arith.constant dense<0.000000e+00> : vector<2x32xf32>
    %72 = tpu.matmul %58, %4, %cst_49 {dimension_numbers = #tpu.dot_dimension_numbers<[1], [0], [0], [1], [0, 0, 1, 1], [], []>} : vector<2x32xf32>, vector<32x32xf32>, vector<2x32xf32> -> vector<2x32xf32>
    %73 = arith.addf %71, %72 : vector<2x32xf32>
    %74 = vector.broadcast %5 : vector<1x32xf32> to vector<2x32xf32>
    %75 = arith.addf %73, %74 : vector<2x32xf32>
    %76 = math.tanh %75 : vector<2x32xf32>
    %c3_50 = arith.constant 3 : index
    %c0_51 = arith.constant 0 : index
    %c0_52 = arith.constant 0 : index
    %77 = vector.load %arg7[%c3_50, %c0_51, %c0_52] : memref<8x32x10xf32, #tpu.memory_space<vmem>>, vector<1x32x10xf32>
    %78 = vector.shape_cast %77 : vector<1x32x10xf32> to vector<32x10xf32>
    %cst_53 = arith.constant dense<0.000000e+00> : vector<2x10xf32>
    %79 = tpu.matmul %76, %78, %cst_53 {dimension_numbers = #tpu.dot_dimension_numbers<[1], [0], [0], [1], [0, 0, 1, 1], [], []>} : vector<2x32xf32>, vector<32x10xf32>, vector<2x10xf32> -> vector<2x10xf32>
    %80 = arith.addf %62, %79 : vector<2x10xf32>
    %c4 = arith.constant 4 : index
    %c0_54 = arith.constant 0 : index
    %c0_55 = arith.constant 0 : index
    %81 = vector.load %arg0[%c4, %c0_54, %c0_55] : memref<8x2x28xf32, #tpu.memory_space<vmem>>, vector<1x2x28xf32>
    %82 = vector.shape_cast %81 : vector<1x2x28xf32> to vector<2x28xf32>
    %cst_56 = arith.constant dense<0.000000e+00> : vector<2x32xf32>
    %83 = tpu.matmul %82, %0, %cst_56 {dimension_numbers = #tpu.dot_dimension_numbers<[1], [0], [0], [1], [0, 0, 1, 1], [], []>} : vector<2x28xf32>, vector<28x32xf32>, vector<2x32xf32> -> vector<2x32xf32>
    %cst_57 = arith.constant dense<0.000000e+00> : vector<2x32xf32>
    %84 = tpu.matmul %70, %1, %cst_57 {dimension_numbers = #tpu.dot_dimension_numbers<[1], [0], [0], [1], [0, 0, 1, 1], [], []>} : vector<2x32xf32>, vector<32x32xf32>, vector<2x32xf32> -> vector<2x32xf32>
    %85 = arith.addf %83, %84 : vector<2x32xf32>
    %86 = vector.broadcast %2 : vector<1x32xf32> to vector<2x32xf32>
    %87 = arith.addf %85, %86 : vector<2x32xf32>
    %88 = math.tanh %87 : vector<2x32xf32>
    %cst_58 = arith.constant dense<0.000000e+00> : vector<2x32xf32>
    %89 = tpu.matmul %88, %3, %cst_58 {dimension_numbers = #tpu.dot_dimension_numbers<[1], [0], [0], [1], [0, 0, 1, 1], [], []>} : vector<2x32xf32>, vector<32x32xf32>, vector<2x32xf32> -> vector<2x32xf32>
    %cst_59 = arith.constant dense<0.000000e+00> : vector<2x32xf32>
    %90 = tpu.matmul %76, %4, %cst_59 {dimension_numbers = #tpu.dot_dimension_numbers<[1], [0], [0], [1], [0, 0, 1, 1], [], []>} : vector<2x32xf32>, vector<32x32xf32>, vector<2x32xf32> -> vector<2x32xf32>
    %91 = arith.addf %89, %90 : vector<2x32xf32>
    %92 = vector.broadcast %5 : vector<1x32xf32> to vector<2x32xf32>
    %93 = arith.addf %91, %92 : vector<2x32xf32>
    %94 = math.tanh %93 : vector<2x32xf32>
    %c4_60 = arith.constant 4 : index
    %c0_61 = arith.constant 0 : index
    %c0_62 = arith.constant 0 : index
    %95 = vector.load %arg7[%c4_60, %c0_61, %c0_62] : memref<8x32x10xf32, #tpu.memory_space<vmem>>, vector<1x32x10xf32>
    %96 = vector.shape_cast %95 : vector<1x32x10xf32> to vector<32x10xf32>
    %cst_63 = arith.constant dense<0.000000e+00> : vector<2x10xf32>
    %97 = tpu.matmul %94, %96, %cst_63 {dimension_numbers = #tpu.dot_dimension_numbers<[1], [0], [0], [1], [0, 0, 1, 1], [], []>} : vector<2x32xf32>, vector<32x10xf32>, vector<2x10xf32> -> vector<2x10xf32>
    %98 = arith.addf %80, %97 : vector<2x10xf32>
    %c5 = arith.constant 5 : index
    %c0_64 = arith.constant 0 : index
    %c0_65 = arith.constant 0 : index
    %99 = vector.load %arg0[%c5, %c0_64, %c0_65] : memref<8x2x28xf32, #tpu.memory_space<vmem>>, vector<1x2x28xf32>
    %100 = vector.shape_cast %99 : vector<1x2x28xf32> to vector<2x28xf32>
    %cst_66 = arith.constant dense<0.000000e+00> : vector<2x32xf32>
    %101 = tpu.matmul %100, %0, %cst_66 {dimension_numbers = #tpu.dot_dimension_numbers<[1], [0], [0], [1], [0, 0, 1, 1], [], []>} : vector<2x28xf32>, vector<28x32xf32>, vector<2x32xf32> -> vector<2x32xf32>
    %cst_67 = arith.constant dense<0.000000e+00> : vector<2x32xf32>
    %102 = tpu.matmul %88, %1, %cst_67 {dimension_numbers = #tpu.dot_dimension_numbers<[1], [0], [0], [1], [0, 0, 1, 1], [], []>} : vector<2x32xf32>, vector<32x32xf32>, vector<2x32xf32> -> vector<2x32xf32>
    %103 = arith.addf %101, %102 : vector<2x32xf32>
    %104 = vector.broadcast %2 : vector<1x32xf32> to vector<2x32xf32>
    %105 = arith.addf %103, %104 : vector<2x32xf32>
    %106 = math.tanh %105 : vector<2x32xf32>
    %cst_68 = arith.constant dense<0.000000e+00> : vector<2x32xf32>
    %107 = tpu.matmul %106, %3, %cst_68 {dimension_numbers = #tpu.dot_dimension_numbers<[1], [0], [0], [1], [0, 0, 1, 1], [], []>} : vector<2x32xf32>, vector<32x32xf32>, vector<2x32xf32> -> vector<2x32xf32>
    %cst_69 = arith.constant dense<0.000000e+00> : vector<2x32xf32>
    %108 = tpu.matmul %94, %4, %cst_69 {dimension_numbers = #tpu.dot_dimension_numbers<[1], [0], [0], [1], [0, 0, 1, 1], [], []>} : vector<2x32xf32>, vector<32x32xf32>, vector<2x32xf32> -> vector<2x32xf32>
    %109 = arith.addf %107, %108 : vector<2x32xf32>
    %110 = vector.broadcast %5 : vector<1x32xf32> to vector<2x32xf32>
    %111 = arith.addf %109, %110 : vector<2x32xf32>
    %112 = math.tanh %111 : vector<2x32xf32>
    %c5_70 = arith.constant 5 : index
    %c0_71 = arith.constant 0 : index
    %c0_72 = arith.constant 0 : index
    %113 = vector.load %arg7[%c5_70, %c0_71, %c0_72] : memref<8x32x10xf32, #tpu.memory_space<vmem>>, vector<1x32x10xf32>
    %114 = vector.shape_cast %113 : vector<1x32x10xf32> to vector<32x10xf32>
    %cst_73 = arith.constant dense<0.000000e+00> : vector<2x10xf32>
    %115 = tpu.matmul %112, %114, %cst_73 {dimension_numbers = #tpu.dot_dimension_numbers<[1], [0], [0], [1], [0, 0, 1, 1], [], []>} : vector<2x32xf32>, vector<32x10xf32>, vector<2x10xf32> -> vector<2x10xf32>
    %116 = arith.addf %98, %115 : vector<2x10xf32>
    %c6 = arith.constant 6 : index
    %c0_74 = arith.constant 0 : index
    %c0_75 = arith.constant 0 : index
    %117 = vector.load %arg0[%c6, %c0_74, %c0_75] : memref<8x2x28xf32, #tpu.memory_space<vmem>>, vector<1x2x28xf32>
    %118 = vector.shape_cast %117 : vector<1x2x28xf32> to vector<2x28xf32>
    %cst_76 = arith.constant dense<0.000000e+00> : vector<2x32xf32>
    %119 = tpu.matmul %118, %0, %cst_76 {dimension_numbers = #tpu.dot_dimension_numbers<[1], [0], [0], [1], [0, 0, 1, 1], [], []>} : vector<2x28xf32>, vector<28x32xf32>, vector<2x32xf32> -> vector<2x32xf32>
    %cst_77 = arith.constant dense<0.000000e+00> : vector<2x32xf32>
    %120 = tpu.matmul %106, %1, %cst_77 {dimension_numbers = #tpu.dot_dimension_numbers<[1], [0], [0], [1], [0, 0, 1, 1], [], []>} : vector<2x32xf32>, vector<32x32xf32>, vector<2x32xf32> -> vector<2x32xf32>
    %121 = arith.addf %119, %120 : vector<2x32xf32>
    %122 = vector.broadcast %2 : vector<1x32xf32> to vector<2x32xf32>
    %123 = arith.addf %121, %122 : vector<2x32xf32>
    %124 = math.tanh %123 : vector<2x32xf32>
    %cst_78 = arith.constant dense<0.000000e+00> : vector<2x32xf32>
    %125 = tpu.matmul %124, %3, %cst_78 {dimension_numbers = #tpu.dot_dimension_numbers<[1], [0], [0], [1], [0, 0, 1, 1], [], []>} : vector<2x32xf32>, vector<32x32xf32>, vector<2x32xf32> -> vector<2x32xf32>
    %cst_79 = arith.constant dense<0.000000e+00> : vector<2x32xf32>
    %126 = tpu.matmul %112, %4, %cst_79 {dimension_numbers = #tpu.dot_dimension_numbers<[1], [0], [0], [1], [0, 0, 1, 1], [], []>} : vector<2x32xf32>, vector<32x32xf32>, vector<2x32xf32> -> vector<2x32xf32>
    %127 = arith.addf %125, %126 : vector<2x32xf32>
    %128 = vector.broadcast %5 : vector<1x32xf32> to vector<2x32xf32>
    %129 = arith.addf %127, %128 : vector<2x32xf32>
    %130 = math.tanh %129 : vector<2x32xf32>
    %c6_80 = arith.constant 6 : index
    %c0_81 = arith.constant 0 : index
    %c0_82 = arith.constant 0 : index
    %131 = vector.load %arg7[%c6_80, %c0_81, %c0_82] : memref<8x32x10xf32, #tpu.memory_space<vmem>>, vector<1x32x10xf32>
    %132 = vector.shape_cast %131 : vector<1x32x10xf32> to vector<32x10xf32>
    %cst_83 = arith.constant dense<0.000000e+00> : vector<2x10xf32>
    %133 = tpu.matmul %130, %132, %cst_83 {dimension_numbers = #tpu.dot_dimension_numbers<[1], [0], [0], [1], [0, 0, 1, 1], [], []>} : vector<2x32xf32>, vector<32x10xf32>, vector<2x10xf32> -> vector<2x10xf32>
    %134 = arith.addf %116, %133 : vector<2x10xf32>
    %c7 = arith.constant 7 : index
    %c0_84 = arith.constant 0 : index
    %c0_85 = arith.constant 0 : index
    %135 = vector.load %arg0[%c7, %c0_84, %c0_85] : memref<8x2x28xf32, #tpu.memory_space<vmem>>, vector<1x2x28xf32>
    %136 = vector.shape_cast %135 : vector<1x2x28xf32> to vector<2x28xf32>
    %cst_86 = arith.constant dense<0.000000e+00> : vector<2x32xf32>
    %137 = tpu.matmul %136, %0, %cst_86 {dimension_numbers = #tpu.dot_dimension_numbers<[1], [0], [0], [1], [0, 0, 1, 1], [], []>} : vector<2x28xf32>, vector<28x32xf32>, vector<2x32xf32> -> vector<2x32xf32>
    %cst_87 = arith.constant dense<0.000000e+00> : vector<2x32xf32>
    %138 = tpu.matmul %124, %1, %cst_87 {dimension_numbers = #tpu.dot_dimension_numbers<[1], [0], [0], [1], [0, 0, 1, 1], [], []>} : vector<2x32xf32>, vector<32x32xf32>, vector<2x32xf32> -> vector<2x32xf32>
    %139 = arith.addf %137, %138 : vector<2x32xf32>
    %140 = vector.broadcast %2 : vector<1x32xf32> to vector<2x32xf32>
    %141 = arith.addf %139, %140 : vector<2x32xf32>
    %142 = math.tanh %141 : vector<2x32xf32>
    %cst_88 = arith.constant dense<0.000000e+00> : vector<2x32xf32>
    %143 = tpu.matmul %142, %3, %cst_88 {dimension_numbers = #tpu.dot_dimension_numbers<[1], [0], [0], [1], [0, 0, 1, 1], [], []>} : vector<2x32xf32>, vector<32x32xf32>, vector<2x32xf32> -> vector<2x32xf32>
    %cst_89 = arith.constant dense<0.000000e+00> : vector<2x32xf32>
    %144 = tpu.matmul %130, %4, %cst_89 {dimension_numbers = #tpu.dot_dimension_numbers<[1], [0], [0], [1], [0, 0, 1, 1], [], []>} : vector<2x32xf32>, vector<32x32xf32>, vector<2x32xf32> -> vector<2x32xf32>
    %145 = arith.addf %143, %144 : vector<2x32xf32>
    %146 = vector.broadcast %5 : vector<1x32xf32> to vector<2x32xf32>
    %147 = arith.addf %145, %146 : vector<2x32xf32>
    %148 = math.tanh %147 : vector<2x32xf32>
    %c7_90 = arith.constant 7 : index
    %c0_91 = arith.constant 0 : index
    %c0_92 = arith.constant 0 : index
    %149 = vector.load %arg7[%c7_90, %c0_91, %c0_92] : memref<8x32x10xf32, #tpu.memory_space<vmem>>, vector<1x32x10xf32>
    %150 = vector.shape_cast %149 : vector<1x32x10xf32> to vector<32x10xf32>
    %cst_93 = arith.constant dense<0.000000e+00> : vector<2x10xf32>
    %151 = tpu.matmul %148, %150, %cst_93 {dimension_numbers = #tpu.dot_dimension_numbers<[1], [0], [0], [1], [0, 0, 1, 1], [], []>} : vector<2x32xf32>, vector<32x10xf32>, vector<2x10xf32> -> vector<2x10xf32>
    %152 = arith.addf %134, %151 : vector<2x10xf32>
    %c0_94 = arith.constant 0 : index
    %c0_95 = arith.constant 0 : index
    %153 = vector.load %arg8[%c0_94, %c0_95] : memref<1x10xf32, #tpu.memory_space<vmem>>, vector<1x10xf32>
    %154 = vector.broadcast %153 : vector<1x10xf32> to vector<2x10xf32>
    %155 = arith.addf %152, %154 : vector<2x10xf32>
    %c0_96 = arith.constant 0 : index
    %c0_97 = arith.constant 0 : index
    %156 = vector.load %arg9[%c0_96, %c0_97] : memref<2x10xf32, #tpu.memory_space<vmem>>, vector<2x10xf32>
    tpu.vector_store %arg9[%c0_96, %c0_97], %155 {strides = array<i32>} : memref<2x10xf32, #tpu.memory_space<vmem>>, vector<2x10xf32>,
    return
  }
}

</mosaic_0001>

<bundles_post_ra>
// kernel: rnn_forward.1
= control target key start
LH: loop header
LB: loop body
LE: loop exit
PB: predicated region body
PF: predicated region fallthrough
CT: control target
= control target key end

     0   :  { %vm130_vm0 = vcmask 1043456   ;;  %v3853_v2 = vmov 0.0   ;;  %s4600_s0 = inlined_call_operand.vmem [shape: f32[8,2,28], index: 0, kind: input, shape index: {}]   ;;  %s4601_s1 = inlined_call_operand.vmem [shape: f32[28,32], index: 1, kind: input, shape index: {}]   ;;  %s4602_s2 = inlined_call_operand.vmem [shape: f32[32,32], index: 2, kind: input, shape index: {}]   ;;  %s4603_s3 = inlined_call_operand.vmem [shape: f32[1,32], index: 3, kind: input, shape index: {}]   ;;  %s4604_s4 = inlined_call_operand.vmem [shape: f32[32,32], index: 4, kind: input, shape index: {}]   ;;  %s4605_s5 = inlined_call_operand.vmem [shape: f32[32,32], index: 5, kind: input, shape index: {}]   ;;  %s4606_s6 = inlined_call_operand.vmem [shape: f32[1,32], index: 6, kind: input, shape index: {}]   ;;  %s4607_s7 = inlined_call_operand.vmem [shape: f32[8,32,10], index: 7, kind: input, shape index: {}]   ;;  %s4608_s8 = inlined_call_operand.vmem [shape: f32[1,10], index: 8, kind: input, shape index: {}]   ;;  %s4609_s9 = inlined_call_operand.hbm [shape: f32[2,10], index: 9, kind: output, shape index: {}]  }
   0x1   :  { %v3909_v0 = vld [vmem:[%s4602_s2 + $0x18] sm:$0xff]  ;;  %3344 = vmatprep.subr.mxu0 %v3853_v2  ;;  %3355 = vmatprep.subr.mxu1 %v3853_v2  ;;  %v3921_v3 = vld [vmem:[%s4602_s2 + $0x10] sm:$0xff]  ;;  %v3936_v5 = vld [vmem:[%s4602_s2 + $0x8] sm:$0xff] }
   0x2   :  { %v3914_v1 = vld [vmem:[%s4601_s1 + $0x18] sm:$0xf]  ;;  %v3926_v4 = vld [vmem:[%s4601_s1 + $0x10] sm:$0xff]  ;;  %3345 = vmatpush3.msra.mxu0 %v3909_v0  ;;  %v3941_v6 = vld [vmem:[%s4601_s1 + $0x8] sm:$0xff] }
   0x3   :  { %3356 = vmatpush3.msk.msra.mxu1 %vm130_vm0, %v3914_v1  ;;  %3346 = vmatprep.subr.mxu0 %v3853_v2 }
   0x4   :  { %3357 = vmatprep.subr.mxu1 %v3853_v2 }
   0x5   :  { %14 = vsyncpa [#allocation3], 0  ;;  %3347 = vmatpush3.msra.mxu0 %v3921_v3  ;;  %3358 = vmatpush3.msra.mxu1 %v3926_v4  ;;  %v3950_v7 = vld [vmem:[%s4602_s2] sm:$0xff]  ;;  %vm126_vm1 = vcmask 228352   ;;  %vm3854_vm2 = vmmov 0   ;;  %v3981_v10 = vld [vmem:[%s4605_s5 + $0x18] sm:$0xff] }
   0x6   :  { %3348 = vmatprep.subr.mxu0 %v3853_v2  ;;  %3359 = vmatprep.subr.mxu1 %v3853_v2  ;;  %v3957_v8 = vld [vmem:[%s4601_s1] sm:$0xff]  ;;  %v3988_v11 = vld [vmem:[%s4605_s5 + $0x10] sm:$0xff]  ;;  %v3993_v12 = vld [vmem:[%s4605_s5 + $0x8] sm:$0xff]  ;;  %vm52_vm3 = vcmask 261120   ;;  %s3855_s30 = smov [#allocation2]   ;;  %vm3044_vm4 = vcmask 74752  }
   0x7   :  { %3349 = vmatpush3.msra.mxu0 %v3936_v5  ;;  %3360 = vmatpush3.msra.mxu1 %v3941_v6  ;;  %v51_v9 = vld [vmem:[%s4600_s0] sm:$0x3]  ;;  %v3999_v13 = vld [vmem:[%s4604_s4 + $0x18] sm:$0xff]  ;;  %v4004_v14 = vld [vmem:[%s4604_s4 + $0x10] sm:$0xff] }
   0x8   :  { %3350 = vmatprep.subr.mxu0 %v3853_v2  ;;  %3361 = vmatprep.subr.mxu1 %v3853_v2  ;;  %v4010_v15 = vld [vmem:[%s4605_s5] sm:$0xff]  ;;  %v4020_v16 = vld [vmem:[%s4604_s4 + $0x8] sm:$0xff]  ;;  %v366_v41 = vld [vmem:[%s4607_s7 + $0x18] sm:$0xff] }
   0x9   :  { %3351 = vmatpush3.msra.mxu0 %v3950_v7  ;;  %3352 = vmatprep.mubr.msk.f32.mxu0 %vm3854_vm2, %v3853_v2  ;;  %v4029_v17 = vld [vmem:[%s4604_s4] sm:$0xff]  ;;  %v365_v43 = vld [vmem:[%s4607_s7 + $0x10] sm:$0xff]  ;;  %v364_v44 = vld [vmem:[%s4607_s7 + $0x8] sm:$0xff] }
   0xa   :  { %3362 = vmatpush3.msra.mxu1 %v3957_v8  ;;  %3363 = vmatprep.mubr.msk.f32.mxu1 %vm3854_vm2, %v3853_v2  ;;  %v4048_v19 = vld [vmem:[%s4603_s3] ss:$0 sm:$0xff]  ;;  %v3065_v26 = vld [vmem:[%s4600_s0 + $0x2] sm:$0x3]  ;;  %v3074_v46 = vld [vmem:[%s4607_s7 + $0x38] sm:$0xff] }
   0xb   :  { %3353 = vmatmul.mubr.f32.vlgmr.msra.gmra.mxu0 %v3853_v2  ;;  %3364 = vmatmul.mubr.msk.f32.vlgmr.msra.gmra.mxu1 %vm126_vm1, %v51_v9  ;;  %v4091_v29 = vld [vmem:[%s4606_s6] ss:$0 sm:$0xff]  ;;  %v3073_v47 = vld [vmem:[%s4607_s7 + $0x30] sm:$0xff]  ;;  %v3072_v48 = vld [vmem:[%s4607_s7 + $0x28] sm:$0xff] }
   0xc   :  { %3366 = vmatprep.subr.mxu0 %v3853_v2  ;;  %3377 = vmatprep.subr.mxu1 %v3853_v2  ;;  %v363_v45 = vld [vmem:[%s4607_s7] sm:$0xff] }
   0xd   :  { %3374 = vmatprep.mubr.msk.f32.mxu0 %vm3854_vm2, %v3853_v2  ;;  %3385 = vmatprep.mubr.msk.f32.mxu1 %vm3854_vm2, %v3853_v2  ;;  %v3071_v49 = vld [vmem:[%s4607_s7 + $0x20] sm:$0xff] }
   0xe   :  { %3367 = vmatpush3.msra.mxu0 %v3981_v10  ;;  %3378 = vmatpush3.msra.mxu1 %v3999_v13  ;;  %v3077_v50 = vld [vmem:[%s4600_s0 + $0x4] sm:$0x3] }
   0xf   :  { %3368 = vmatprep.subr.mxu0 %v3853_v2  ;;  %3379 = vmatprep.subr.mxu1 %v3853_v2 }
  0x10   :  { %3369 = vmatpush3.msra.mxu0 %v3988_v11  ;;  %3380 = vmatpush3.msra.mxu1 %v4004_v14 }
  0x11   :  { %3370 = vmatprep.subr.mxu0 %v3853_v2  ;;  %3381 = vmatprep.subr.mxu1 %v3853_v2 }
  0x12   :  { %3371 = vmatpush3.msra.mxu0 %v3993_v12  ;;  %3382 = vmatpush3.msra.mxu1 %v4020_v16 }
  0x13   :  { %3372 = vmatprep.subr.mxu0 %v3853_v2  ;;  %3383 = vmatprep.subr.mxu1 %v3853_v2 }
  0x14   :  { %3373 = vmatpush3.msra.mxu0 %v4010_v15  ;;  %3384 = vmatpush3.msra.mxu1 %v4029_v17 }
  0x15   :  { %3388 = vmatprep.subr.mxu0 %v3853_v2  ;;  %3375 = vmatmul.mubr.f32.vlgmr.msra.gmra.mxu0 %v3853_v2 }
  0x16   :  { %3389 = vmatpush3.msra.mxu0 %v3909_v0  ;;  %3396 = vmatprep.mubr.msk.f32.mxu0 %vm3854_vm2, %v3853_v2 }
  0x17   :  { %3390 = vmatprep.subr.mxu0 %v3853_v2  ;;  %3399 = vmatprep.subr.mxu1 %v3853_v2 }
  0x18   :  { %3391 = vmatpush3.msra.mxu0 %v3921_v3 }
  0x19   :  { %3392 = vmatprep.subr.mxu0 %v3853_v2 }
  0x1a   :  { %3393 = vmatpush3.msra.mxu0 %v3936_v5 }
  0x1b   :  { %3394 = vmatprep.subr.mxu0 %v3853_v2 }
  0x1c   :  { %3395 = vmatpush3.msra.mxu0 %v3950_v7 }
  0x1d   :  { %3410 = vmatprep.subr.mxu0 %v3853_v2 }
  0xcb   :  { %v122_v18 = vpop.f32.mrf.mxu0  ;;  %v200_v20 = vpop.f32.mrf.mxu1 }
  0xcc   :  { %v201_v21 = vadd.f32 %v200_v20, %v122_v18 }
  0xcd   :  { %v3354_v22 = vpop.f32.mrf.mxu0  ;;  %v3365_v23 = vpop.f32.mrf.mxu1 }
  0xce   :  { %v210_v24 = vadd.f32 %v4048_v19, %v201_v21 }
  0xd0   :  { %3787 = vtanh.f32 %v210_v24 }
  0xd5   :  { %v278_v27 = vpop.f32.mrf.mxu0 }
  0xd7   :  { %v3376_v28 = vpop.f32.mrf.mxu0 }
  0xd8   :  { %v3083_v28 = vld [vmem:[%s4607_s7 + $0x40] sm:$0xff] }
  0xdd   :  { %v3788_v25 = vpop.eup %3787 }
  0xde   :  { %3386 = vmatmul.mubr.msk.f32.vlgmr.msra.gmra.mxu1 %vm52_vm3, %v3788_v25  ;;  %3397 = vmatmul.mubr.msk.f32.vlgmr.msra.gmra.mxu0 %vm52_vm3, %v3788_v25  ;;  %v3086_v25 = vld [vmem:[%s4607_s7 + $0x58] sm:$0xff] }
  0xdf   :  { %3400 = vmatpush3.msk.msra.mxu1 %vm130_vm0, %v3914_v1  ;;  %3407 = vmatprep.mubr.msk.f32.mxu1 %vm3854_vm2, %v3853_v2 }
  0xe0   :  { %3401 = vmatprep.subr.mxu1 %v3853_v2  ;;  %3411 = vmatpush3.msra.mxu0 %v3981_v10 }
  0xe1   :  { %3402 = vmatpush3.msra.mxu1 %v3926_v4  ;;  %3412 = vmatprep.subr.mxu0 %v3853_v2 }
  0xe2   :  { %3403 = vmatprep.subr.mxu1 %v3853_v2  ;;  %3413 = vmatpush3.msra.mxu0 %v3988_v11 }
  0xe3   :  { %3404 = vmatpush3.msra.mxu1 %v3941_v6  ;;  %3414 = vmatprep.subr.mxu0 %v3853_v2 }
  0xe4   :  { %3405 = vmatprep.subr.mxu1 %v3853_v2  ;;  %3415 = vmatpush3.msra.mxu0 %v3993_v12 }
  0xe5   :  { %3406 = vmatpush3.msra.mxu1 %v3957_v8  ;;  %3416 = vmatprep.subr.mxu0 %v3853_v2 }
  0xe6   :  { %3408 = vmatmul.mubr.msk.f32.vlgmr.msra.gmra.mxu1 %vm126_vm1, %v3065_v26  ;;  %3421 = vmatprep.subr.mxu1 %v3853_v2  ;;  %v3085_v26 = vld [vmem:[%s4607_s7 + $0x50] sm:$0xff] }
  0xe7   :  { %3417 = vmatpush3.msra.mxu0 %v4010_v15  ;;  %3418 = vmatprep.mubr.msk.f32.mxu0 %vm3854_vm2, %v3853_v2 }
  0xe8   :  { %3422 = vmatpush3.msra.mxu1 %v3999_v13  ;;  %3429 = vmatprep.mubr.msk.f32.mxu1 %vm3854_vm2, %v3853_v2 }
  0xe9   :  { %3423 = vmatprep.subr.mxu1 %v3853_v2  ;;  %3432 = vmatprep.subr.mxu0 %v3853_v2 }
  0xea   :  { %3424 = vmatpush3.msra.mxu1 %v4004_v14 }
  0xeb   :  { %3425 = vmatprep.subr.mxu1 %v3853_v2 }
  0xec   :  { %3426 = vmatpush3.msra.mxu1 %v4020_v16 }
  0xed   :  { %3427 = vmatprep.subr.mxu1 %v3853_v2 }
  0xee   :  { %3428 = vmatpush3.msra.mxu1 %v4029_v17 }
  0xef   :  { %3443 = vmatprep.subr.mxu1 %v3853_v2 }
 0x19e   :  { %v351_v30 = vpop.f32.mrf.mxu1  ;;  %v435_v31 = vpop.f32.mrf.mxu0 }
 0x19f   :  { %v352_v32 = vadd.f32 %v351_v30, %v278_v27  ;;  %v3084_v27 = vld [vmem:[%s4607_s7 + $0x48] sm:$0xff] }
 0x1a0   :  { %v3387_v33 = vpop.f32.mrf.mxu1  ;;  %v3398_v34 = vpop.f32.mrf.mxu0 }
 0x1a1   :  { %v361_v35 = vadd.f32 %v4091_v29, %v352_v32 }
 0x1a3   :  { %3789 = vtanh.f32 %v361_v35 }
 0x1a6   :  { %v508_v36 = vpop.f32.mrf.mxu1 }
 0x1a7   :  { %v509_v37 = vadd.f32 %v508_v36, %v435_v31 }
 0x1a8   :  { %v3409_v38 = vpop.f32.mrf.mxu1 }
 0x1a9   :  { %v512_v39 = vadd.f32 %v4048_v19, %v509_v37  ;;  %v3088_v37 = vld [vmem:[%s4600_s0 + $0x6] sm:$0x3] }
 0x1ab   :  { %3791 = vtanh.f32 %v512_v39 }
 0x1b0   :  { %v3790_v40 = vpop.eup %3789 }
 0x1b1   :  { %3419 = vmatmul.mubr.msk.f32.vlgmr.msra.gmra.mxu0 %vm52_vm3, %v3790_v40 }
 0x1b2   :  { %3440 = vmatprep.mubr.msk.f32.mxu0 %vm3854_vm2, %v3853_v2  ;;  %3433 = vmatpush3.msra.mxu0 %v3074_v46 }
 0x1b3   :  { %3434 = vmatprep.subr.mxu0 %v3853_v2 }
 0x1b4   :  { %3435 = vmatpush3.msra.mxu0 %v3073_v47 }
 0x1b5   :  { %3436 = vmatprep.subr.mxu0 %v3853_v2 }
 0x1b6   :  { %3437 = vmatpush3.msra.mxu0 %v3072_v48 }
 0x1b7   :  { %3438 = vmatprep.subr.mxu0 %v3853_v2 }
 0x1b8   :  { %v4101_v42 = vpop.eup %3791  ;;  %3439 = vmatpush3.msra.mxu0 %v3071_v49  ;;  %v3097_v49 = vld [vmem:[%s4607_s7 + $0x78] sm:$0xff] }
 0x1b9   :  { %3430 = vmatmul.mubr.msk.f32.vlgmr.msra.gmra.mxu1 %vm52_vm3, %v4101_v42  ;;  %3454 = vmatprep.subr.mxu0 %v3853_v2 }
 0x1ba   :  { %3444 = vmatpush3.msra.mxu1 %v366_v41  ;;  %3451 = vmatprep.mubr.msk.f32.mxu1 %vm3854_vm2, %v3853_v2 }
 0x1bb   :  { %3445 = vmatprep.subr.mxu1 %v3853_v2 }
 0x1bc   :  { %3446 = vmatpush3.msra.mxu1 %v365_v43 }
 0x1bd   :  { %3447 = vmatprep.subr.mxu1 %v3853_v2 }
 0x1be   :  { %3448 = vmatpush3.msra.mxu1 %v364_v44 }
 0x1bf   :  { %3449 = vmatprep.subr.mxu1 %v3853_v2 }
 0x1c0   :  { %3450 = vmatpush3.msra.mxu1 %v363_v45 }
 0x1c1   :  { %3452 = vmatmul.mubr.msk.f32.vlgmr.msra.gmra.mxu1 %vm52_vm3, %v3790_v40  ;;  %3465 = vmatprep.subr.mxu1 %v3853_v2 }
 0x1c2   :  { %3466 = vmatpush3.msk.msra.mxu1 %vm130_vm0, %v3914_v1  ;;  %3473 = vmatprep.mubr.msk.f32.mxu1 %vm3854_vm2, %v3853_v2 }
 0x1c3   :  { %3467 = vmatprep.subr.mxu1 %v3853_v2 }
 0x1c4   :  { %3468 = vmatpush3.msra.mxu1 %v3926_v4 }
 0x1c5   :  { %3469 = vmatprep.subr.mxu1 %v3853_v2 }
 0x1c6   :  { %3470 = vmatpush3.msra.mxu1 %v3941_v6 }
 0x1c7   :  { %3471 = vmatprep.subr.mxu1 %v3853_v2 }
 0x1c8   :  { %3472 = vmatpush3.msra.mxu1 %v3957_v8 }
 0x1c9   :  { %3487 = vmatprep.subr.mxu1 %v3853_v2  ;;  %3474 = vmatmul.mubr.msk.f32.vlgmr.msra.gmra.mxu1 %vm126_vm1, %v3077_v50  ;;  %v3096_v50 = vld [vmem:[%s4607_s7 + $0x70] sm:$0xff] }
 0x1ca   :  { %3488 = vmatpush3.msra.mxu1 %v3999_v13  ;;  %3495 = vmatprep.mubr.msk.f32.mxu1 %vm3854_vm2, %v3853_v2 }
 0x1cb   :  { %3489 = vmatprep.subr.mxu1 %v3853_v2 }
 0x1cc   :  { %3490 = vmatpush3.msra.mxu1 %v4004_v14 }
 0x1cd   :  { %3491 = vmatprep.subr.mxu1 %v3853_v2 }
 0x1ce   :  { %3492 = vmatpush3.msra.mxu1 %v4020_v16 }
 0x1cf   :  { %3493 = vmatprep.subr.mxu1 %v3853_v2 }
 0x1d0   :  { %3494 = vmatpush3.msra.mxu1 %v4029_v17 }
 0x1d1   :  { %3509 = vmatprep.subr.mxu1 %v3853_v2 }
 0x271   :  { %v583_v51 = vpop.f32.mrf.mxu0 }
 0x273   :  { %v3420_v52 = vpop.f32.mrf.mxu0 }
 0x274   :  { %v3094_v52 = vld [vmem:[%s4607_s7 + $0x60] sm:$0xff] }
 0x279   :  { %v656_v53 = vpop.f32.mrf.mxu1 }
 0x27a   :  { %v657_v54 = vadd.f32 %v656_v53, %v583_v51  ;;  %v3095_v51 = vld [vmem:[%s4607_s7 + $0x68] sm:$0xff] }
 0x27b   :  { %v3431_v55 = vpop.f32.mrf.mxu1 }
 0x27c   :  { %v660_v56 = vadd.f32 %v4091_v29, %v657_v54 }
 0x27e   :  { %3793 = vtanh.f32 %v660_v56 }
 0x281   :  { %v4163_v57 = vpop.f32.mrf.mxu1 }
 0x283   :  { %v3453_v58 = vpop.f32.mrf.mxu1 }
 0x289   :  { %v951_v60 = vpop.f32.mrf.mxu1 }
 0x28b   :  { %v3794_v59 = vpop.eup %3793  ;;  %v3475_v61 = vpop.f32.mrf.mxu1 }
 0x28c   :  { %3441 = vmatmul.mubr.msk.f32.vlgmr.msra.gmra.mxu0 %vm52_vm3, %v3794_v59 }
 0x28d   :  { %3455 = vmatpush3.msra.mxu0 %v3909_v0  ;;  %3462 = vmatprep.mubr.msk.f32.mxu0 %vm3854_vm2, %v3853_v2 }
 0x28e   :  { %3456 = vmatprep.subr.mxu0 %v3853_v2 }
 0x28f   :  { %3457 = vmatpush3.msra.mxu0 %v3921_v3 }
 0x290   :  { %3458 = vmatprep.subr.mxu0 %v3853_v2 }
 0x291   :  { %3459 = vmatpush3.msra.mxu0 %v3936_v5 }
 0x292   :  { %3460 = vmatprep.subr.mxu0 %v3853_v2 }
 0x293   :  { %3461 = vmatpush3.msra.mxu0 %v3950_v7 }
 0x294   :  { %3463 = vmatmul.mubr.msk.f32.vlgmr.msra.gmra.mxu0 %vm52_vm3, %v4101_v42  ;;  %3476 = vmatprep.subr.mxu0 %v3853_v2 }
 0x295   :  { %3477 = vmatpush3.msra.mxu0 %v3981_v10  ;;  %3484 = vmatprep.mubr.msk.f32.mxu0 %vm3854_vm2, %v3853_v2 }
 0x296   :  { %3478 = vmatprep.subr.mxu0 %v3853_v2 }
 0x297   :  { %3479 = vmatpush3.msra.mxu0 %v3988_v11 }
 0x298   :  { %3480 = vmatprep.subr.mxu0 %v3853_v2 }
 0x299   :  { %3481 = vmatpush3.msra.mxu0 %v3993_v12 }
 0x29a   :  { %3482 = vmatprep.subr.mxu0 %v3853_v2 }
 0x29b   :  { %3483 = vmatpush3.msra.mxu0 %v4010_v15 }
 0x29c   :  { %3485 = vmatmul.mubr.msk.f32.vlgmr.msra.gmra.mxu0 %vm52_vm3, %v3794_v59  ;;  %3498 = vmatprep.subr.mxu0 %v3853_v2 }
 0x29d   :  { %3506 = vmatprep.mubr.msk.f32.mxu0 %vm3854_vm2, %v3853_v2  ;;  %3499 = vmatpush3.msra.mxu0 %v3086_v25  ;;  %v3108_v25 = vld [vmem:[%s4607_s7 + $0x98] sm:$0xff] }
 0x29e   :  { %3500 = vmatprep.subr.mxu0 %v3853_v2 }
 0x29f   :  { %3501 = vmatpush3.msra.mxu0 %v3085_v26  ;;  %v3107_v26 = vld [vmem:[%s4607_s7 + $0x90] sm:$0xff] }
 0x2a0   :  { %3502 = vmatprep.subr.mxu0 %v3853_v2 }
 0x2a1   :  { %3503 = vmatpush3.msra.mxu0 %v3084_v27  ;;  %v3106_v27 = vld [vmem:[%s4607_s7 + $0x88] sm:$0xff] }
 0x2a2   :  { %3504 = vmatprep.subr.mxu0 %v3853_v2 }
 0x2a3   :  { %3505 = vmatpush3.msra.mxu0 %v3083_v28  ;;  %v3105_v28 = vld [vmem:[%s4607_s7 + $0x80] sm:$0xff] }
 0x2a4   :  { %3520 = vmatprep.subr.mxu0 %v3853_v2 }
 0x34c   :  { %v4191_v62 = vpop.f32.mrf.mxu0 }
 0x34d   :  { %v807_v38 = vadd.f32 %v4163_v57, %v4191_v62 }
 0x34e   :  { %v3442_v63 = vpop.f32.mrf.mxu0 }
 0x354   :  { %v878_v9 = vpop.f32.mrf.mxu0 }
 0x355   :  { %v952_v18 = vadd.f32 %v951_v60, %v878_v9  ;;  %v3099_v60 = vld [vmem:[%s4600_s0 + $0x8] sm:$0x3] }
 0x356   :  { %v3464_v20 = vpop.f32.mrf.mxu0 }
 0x357   :  { %v955_v21 = vadd.f32 %v4048_v19, %v952_v18 }
 0x359   :  { %3795 = vtanh.f32 %v955_v21 }
 0x35c   :  { %v1023_v22 = vpop.f32.mrf.mxu0 }
 0x35e   :  { %v3486_v23 = vpop.f32.mrf.mxu0 }
 0x366   :  { %v3796_v24 = vpop.eup %3795 }
 0x367   :  { %3496 = vmatmul.mubr.msk.f32.vlgmr.msra.gmra.mxu1 %vm52_vm3, %v3796_v24 }
 0x368   :  { %3510 = vmatpush3.msra.mxu1 %v3909_v0  ;;  %3517 = vmatprep.mubr.msk.f32.mxu1 %vm3854_vm2, %v3853_v2 }
 0x369   :  { %3511 = vmatprep.subr.mxu1 %v3853_v2 }
 0x36a   :  { %3512 = vmatpush3.msra.mxu1 %v3921_v3 }
 0x36b   :  { %3513 = vmatprep.subr.mxu1 %v3853_v2 }
 0x36c   :  { %3514 = vmatpush3.msra.mxu1 %v3936_v5 }
 0x36d   :  { %3515 = vmatprep.subr.mxu1 %v3853_v2 }
 0x36e   :  { %3516 = vmatpush3.msra.mxu1 %v3950_v7 }
 0x36f   :  { %3518 = vmatmul.mubr.msk.f32.vlgmr.msra.gmra.mxu1 %vm52_vm3, %v3796_v24  ;;  %3531 = vmatprep.subr.mxu1 %v3853_v2 }
 0x370   :  { %3532 = vmatpush3.msra.mxu1 %v3981_v10  ;;  %3539 = vmatprep.mubr.msk.f32.mxu1 %vm3854_vm2, %v3853_v2 }
 0x371   :  { %3533 = vmatprep.subr.mxu1 %v3853_v2 }
 0x372   :  { %3534 = vmatpush3.msra.mxu1 %v3988_v11 }
 0x373   :  { %3535 = vmatprep.subr.mxu1 %v3853_v2 }
 0x374   :  { %3536 = vmatpush3.msra.mxu1 %v3993_v12 }
 0x375   :  { %3537 = vmatprep.subr.mxu1 %v3853_v2 }
 0x376   :  { %3538 = vmatpush3.msra.mxu1 %v4010_v15 }
 0x377   :  { %3553 = vmatprep.subr.mxu1 %v3853_v2 }
 0x427   :  { %v1096_v30 = vpop.f32.mrf.mxu1 }
 0x428   :  { %v1097_v31 = vadd.f32 %v1096_v30, %v1023_v22 }
 0x429   :  { %v3497_v32 = vpop.f32.mrf.mxu1 }
 0x42a   :  { %v1100_v33 = vadd.f32 %v4091_v29, %v1097_v31 }
 0x42c   :  { %3797 = vtanh.f32 %v1100_v33 }
 0x42f   :  { %v1249_v34 = vpop.f32.mrf.mxu1 }
 0x431   :  { %v3519_v35 = vpop.f32.mrf.mxu1 }
 0x439   :  { %v3798_v36 = vpop.eup %3797 }
 0x43a   :  { %3507 = vmatmul.mubr.msk.f32.vlgmr.msra.gmra.mxu0 %vm52_vm3, %v3798_v36  ;;  %3540 = vmatmul.mubr.msk.f32.vlgmr.msra.gmra.mxu1 %vm52_vm3, %v3798_v36 }
 0x43b   :  { %3521 = vmatpush3.msk.msra.mxu0 %vm130_vm0, %v3914_v1  ;;  %3528 = vmatprep.mubr.msk.f32.mxu0 %vm3854_vm2, %v3853_v2 }
 0x43c   :  { %3522 = vmatprep.subr.mxu0 %v3853_v2  ;;  %3561 = vmatprep.mubr.msk.f32.mxu1 %vm3854_vm2, %v3853_v2 }
 0x43d   :  { %3523 = vmatpush3.msra.mxu0 %v3926_v4  ;;  %3554 = vmatpush3.msra.mxu1 %v3097_v49 }
 0x43e   :  { %3524 = vmatprep.subr.mxu0 %v3853_v2  ;;  %3555 = vmatprep.subr.mxu1 %v3853_v2 }
 0x43f   :  { %3525 = vmatpush3.msra.mxu0 %v3941_v6  ;;  %3556 = vmatpush3.msra.mxu1 %v3096_v50 }
 0x440   :  { %3526 = vmatprep.subr.mxu0 %v3853_v2  ;;  %3557 = vmatprep.subr.mxu1 %v3853_v2 }
 0x441   :  { %3527 = vmatpush3.msra.mxu0 %v3957_v8  ;;  %3558 = vmatpush3.msra.mxu1 %v3095_v51 }
 0x442   :  { %3529 = vmatmul.mubr.msk.f32.vlgmr.msra.gmra.mxu0 %vm126_vm1, %v3088_v37  ;;  %3542 = vmatprep.subr.mxu0 %v3853_v2  ;;  %v3110_v37 = vld [vmem:[%s4600_s0 + $0xa] sm:$0x3] }
 0x443   :  { %3543 = vmatpush3.msra.mxu0 %v3999_v13  ;;  %3550 = vmatprep.mubr.msk.f32.mxu0 %vm3854_vm2, %v3853_v2 }
 0x444   :  { %3544 = vmatprep.subr.mxu0 %v3853_v2  ;;  %3559 = vmatprep.subr.mxu1 %v3853_v2 }
 0x445   :  { %3545 = vmatpush3.msra.mxu0 %v4004_v14  ;;  %3560 = vmatpush3.msra.mxu1 %v3094_v52 }
 0x446   :  { %3546 = vmatprep.subr.mxu0 %v3853_v2  ;;  %3575 = vmatprep.subr.mxu1 %v3853_v2 }
 0x447   :  { %3547 = vmatpush3.msra.mxu0 %v4020_v16 }
 0x448   :  { %3548 = vmatprep.subr.mxu0 %v3853_v2 }
 0x449   :  { %3549 = vmatpush3.msra.mxu0 %v4029_v17 }
 0x44a   :  { %3564 = vmatprep.subr.mxu0 %v3853_v2 }
 0x4fa   :  { %v1176_v39 = vpop.f32.mrf.mxu0  ;;  %v1394_v40 = vpop.f32.mrf.mxu1 }
 0x4fb   :  { %v4264_v41 = vadd.f32 %v1176_v39, %v807_v38 }
 0x4fc   :  { %v3508_v42 = vpop.f32.mrf.mxu0  ;;  %v3541_v43 = vpop.f32.mrf.mxu1 }
 0x502   :  { %v1322_v44 = vpop.f32.mrf.mxu0 }
 0x503   :  { %v1323_v45 = vadd.f32 %v1322_v44, %v1249_v34 }
 0x504   :  { %v3530_v46 = vpop.f32.mrf.mxu0 }
 0x505   :  { %v1326_v47 = vadd.f32 %v4048_v19, %v1323_v45 }
 0x507   :  { %3799 = vtanh.f32 %v1326_v47 }
 0x514   :  { %v3800_v48 = vpop.eup %3799 }
 0x515   :  { %3551 = vmatmul.mubr.msk.f32.vlgmr.msra.gmra.mxu0 %vm52_vm3, %v3800_v48 }
 0x516   :  { %3565 = vmatpush3.msra.mxu0 %v3909_v0  ;;  %3572 = vmatprep.mubr.msk.f32.mxu0 %vm3854_vm2, %v3853_v2 }
 0x517   :  { %3566 = vmatprep.subr.mxu0 %v3853_v2 }
 0x518   :  { %3567 = vmatpush3.msra.mxu0 %v3921_v3 }
 0x519   :  { %3568 = vmatprep.subr.mxu0 %v3853_v2 }
 0x51a   :  { %3569 = vmatpush3.msra.mxu0 %v3936_v5 }
 0x51b   :  { %3570 = vmatprep.subr.mxu0 %v3853_v2 }
 0x51c   :  { %3571 = vmatpush3.msra.mxu0 %v3950_v7 }
 0x51d   :  { %3573 = vmatmul.mubr.msk.f32.vlgmr.msra.gmra.mxu0 %vm52_vm3, %v3800_v48  ;;  %3586 = vmatprep.subr.mxu0 %v3853_v2  ;;  %v3116_v48 = vld [vmem:[%s4607_s7 + $0xa0] sm:$0xff] }
 0x51e   :  { %3587 = vmatpush3.msra.mxu0 %v3981_v10  ;;  %3594 = vmatprep.mubr.msk.f32.mxu0 %vm3854_vm2, %v3853_v2 }
 0x51f   :  { %3588 = vmatprep.subr.mxu0 %v3853_v2 }
 0x520   :  { %3589 = vmatpush3.msra.mxu0 %v3988_v11 }
 0x521   :  { %3590 = vmatprep.subr.mxu0 %v3853_v2 }
 0x522   :  { %3591 = vmatpush3.msra.mxu0 %v3993_v12 }
 0x523   :  { %3592 = vmatprep.subr.mxu0 %v3853_v2 }
 0x524   :  { %3593 = vmatpush3.msra.mxu0 %v4010_v15 }
 0x525   :  { %3608 = vmatprep.subr.mxu0 %v3853_v2 }
 0x5d5   :  { %v1467_v53 = vpop.f32.mrf.mxu0 }
 0x5d6   :  { %v1468_v54 = vadd.f32 %v1467_v53, %v1394_v40 }
 0x5d7   :  { %v3552_v55 = vpop.f32.mrf.mxu0 }
 0x5d8   :  { %v1471_v56 = vadd.f32 %v4091_v29, %v1468_v54 }
 0x5da   :  { %3801 = vtanh.f32 %v1471_v56  ;;  %v3121_v56 = vld [vmem:[%s4600_s0 + $0xc] sm:$0x3] }
 0x5dd   :  { %v1620_v57 = vpop.f32.mrf.mxu0 }
 0x5df   :  { %v3574_v58 = vpop.f32.mrf.mxu0 }
 0x5e7   :  { %v3802_v59 = vpop.eup %3801 }
 0x5e8   :  { %3562 = vmatmul.mubr.msk.f32.vlgmr.msra.gmra.mxu1 %vm52_vm3, %v3802_v59  ;;  %3595 = vmatmul.mubr.msk.f32.vlgmr.msra.gmra.mxu0 %vm52_vm3, %v3802_v59 }
 0x5e9   :  { %3576 = vmatpush3.msk.msra.mxu1 %vm130_vm0, %v3914_v1  ;;  %3583 = vmatprep.mubr.msk.f32.mxu1 %vm3854_vm2, %v3853_v2 }
 0x5ea   :  { %3577 = vmatprep.subr.mxu1 %v3853_v2  ;;  %3616 = vmatprep.mubr.msk.f32.mxu0 %vm3854_vm2, %v3853_v2 }
 0x5eb   :  { %3578 = vmatpush3.msra.mxu1 %v3926_v4  ;;  %3609 = vmatpush3.msra.mxu0 %v3108_v25  ;;  %v3825_v25 = vld [vmem:[%s4601_s1] sm:$0xff] }
 0x5ec   :  { %3579 = vmatprep.subr.mxu1 %v3853_v2  ;;  %3610 = vmatprep.subr.mxu0 %v3853_v2 }
 0x5ed   :  { %3580 = vmatpush3.msra.mxu1 %v3941_v6  ;;  %3611 = vmatpush3.msra.mxu0 %v3107_v26  ;;  %v3826_v26 = vld [vmem:[%s4604_s4 + $0x18] sm:$0xff] }
 0x5ee   :  { %3581 = vmatprep.subr.mxu1 %v3853_v2  ;;  %3612 = vmatprep.subr.mxu0 %v3853_v2 }
 0x5ef   :  { %3582 = vmatpush3.msra.mxu1 %v3957_v8  ;;  %3613 = vmatpush3.msra.mxu0 %v3106_v27  ;;  %v3827_v27 = vld [vmem:[%s4604_s4 + $0x10] sm:$0xff] }
 0x5f0   :  { %3584 = vmatmul.mubr.msk.f32.vlgmr.msra.gmra.mxu1 %vm126_vm1, %v3099_v60  ;;  %3597 = vmatprep.subr.mxu1 %v3853_v2  ;;  %v3820_v60 = vld [vmem:[%s4602_s2 + $0x10] sm:$0xff] }
 0x5f1   :  { %3598 = vmatpush3.msra.mxu1 %v3999_v13  ;;  %3605 = vmatprep.mubr.msk.f32.mxu1 %vm3854_vm2, %v3853_v2 }
 0x5f2   :  { %3599 = vmatprep.subr.mxu1 %v3853_v2  ;;  %3614 = vmatprep.subr.mxu0 %v3853_v2 }
 0x5f3   :  { %3600 = vmatpush3.msra.mxu1 %v4004_v14  ;;  %3615 = vmatpush3.msra.mxu0 %v3105_v28  ;;  %v3828_v28 = vld [vmem:[%s4604_s4 + $0x8] sm:$0xff] }
 0x5f4   :  { %3601 = vmatprep.subr.mxu1 %v3853_v2  ;;  %3630 = vmatprep.subr.mxu0 %v3853_v2 }
 0x5f5   :  { %3602 = vmatpush3.msra.mxu1 %v4020_v16 }
 0x5f6   :  { %3603 = vmatprep.subr.mxu1 %v3853_v2 }
 0x5f7   :  { %3604 = vmatpush3.msra.mxu1 %v4029_v17 }
 0x5f8   :  { %3619 = vmatprep.subr.mxu1 %v3853_v2 }
 0x6a8   :  { %v1547_v61 = vpop.f32.mrf.mxu1  ;;  %v1765_v62 = vpop.f32.mrf.mxu0 }
 0x6a9   :  { %v4336_v63 = vadd.f32 %v1547_v61, %v4264_v41 }
 0x6aa   :  { %v3563_v9 = vpop.f32.mrf.mxu1  ;;  %v3596_v18 = vpop.f32.mrf.mxu0 }
 0x6b0   :  { %v1693_v20 = vpop.f32.mrf.mxu1 }
 0x6b1   :  { %v1694_v21 = vadd.f32 %v1693_v20, %v1620_v57 }
 0x6b2   :  { %v3585_v22 = vpop.f32.mrf.mxu1 }
 0x6b3   :  { %v1697_v23 = vadd.f32 %v4048_v19, %v1694_v21  ;;  %v3822_v21 = vld [vmem:[%s4601_s1 + $0x18] sm:$0xf]  ;;  %v3823_v22 = vld [vmem:[%s4601_s1 + $0x10] sm:$0xff] }
 0x6b5   :  { %3803 = vtanh.f32 %v1697_v23  ;;  %v3824_v23 = vld [vmem:[%s4601_s1 + $0x8] sm:$0xff] }
 0x6c2   :  { %v3804_v24 = vpop.eup %3803 }
 0x6c3   :  { %3606 = vmatmul.mubr.msk.f32.vlgmr.msra.gmra.mxu1 %vm52_vm3, %v3804_v24 }
 0x6c4   :  { %3620 = vmatpush3.msra.mxu1 %v3909_v0  ;;  %3627 = vmatprep.mubr.msk.f32.mxu1 %vm3854_vm2, %v3853_v2 }
 0x6c5   :  { %3621 = vmatprep.subr.mxu1 %v3853_v2 }
 0x6c6   :  { %3622 = vmatpush3.msra.mxu1 %v3921_v3 }
 0x6c7   :  { %3623 = vmatprep.subr.mxu1 %v3853_v2 }
 0x6c8   :  { %3624 = vmatpush3.msra.mxu1 %v3936_v5 }
 0x6c9   :  { %3625 = vmatprep.subr.mxu1 %v3853_v2 }
 0x6ca   :  { %3626 = vmatpush3.msra.mxu1 %v3950_v7 }
 0x6cb   :  { %3628 = vmatmul.mubr.msk.f32.vlgmr.msra.gmra.mxu1 %vm52_vm3, %v3804_v24  ;;  %3641 = vmatprep.subr.mxu1 %v3853_v2  ;;  %v3132_v24 = vld [vmem:[%s4600_s0 + $0xe] sm:$0x3] }
 0x6cc   :  { %3642 = vmatpush3.msra.mxu1 %v3981_v10  ;;  %3649 = vmatprep.mubr.msk.f32.mxu1 %vm3854_vm2, %v3853_v2 }
 0x6cd   :  { %3643 = vmatprep.subr.mxu1 %v3853_v2 }
 0x6ce   :  { %3644 = vmatpush3.msra.mxu1 %v3988_v11 }
 0x6cf   :  { %3645 = vmatprep.subr.mxu1 %v3853_v2 }
 0x6d0   :  { %3646 = vmatpush3.msra.mxu1 %v3993_v12 }
 0x6d1   :  { %3647 = vmatprep.subr.mxu1 %v3853_v2 }
 0x6d2   :  { %3648 = vmatpush3.msra.mxu1 %v4010_v15 }
 0x6d3   :  { %3663 = vmatprep.subr.mxu1 %v3853_v2 }
 0x783   :  { %v1838_v30 = vpop.f32.mrf.mxu1 }
 0x784   :  { %v1839_v31 = vadd.f32 %v1838_v30, %v1765_v62  ;;  %v3829_v30 = vld [vmem:[%s4604_s4] sm:$0xff] }
 0x785   :  { %v3607_v32 = vpop.f32.mrf.mxu1 }
 0x786   :  { %v1842_v33 = vadd.f32 %v4091_v29, %v1839_v31 }
 0x788   :  { %3805 = vtanh.f32 %v1842_v33 }
 0x78b   :  { %v1991_v34 = vpop.f32.mrf.mxu1 }
 0x78d   :  { %v3629_v35 = vpop.f32.mrf.mxu1 }
 0x795   :  { %v3806_v36 = vpop.eup %3805 }
 0x796   :  { %3617 = vmatmul.mubr.msk.f32.vlgmr.msra.gmra.mxu0 %vm52_vm3, %v3806_v36  ;;  %3650 = vmatmul.mubr.msk.f32.vlgmr.msra.gmra.mxu1 %vm52_vm3, %v3806_v36 }
 0x797   :  { %3631 = vmatpush3.msk.msra.mxu0 %vm130_vm0, %v3914_v1  ;;  %3638 = vmatprep.mubr.msk.f32.mxu0 %vm3854_vm2, %v3853_v2 }
 0x798   :  { %3632 = vmatprep.subr.mxu0 %v3853_v2  ;;  %3671 = vmatprep.mubr.msk.f32.mxu1 %vm3854_vm2, %v3853_v2 }
 0x799   :  { %3633 = vmatpush3.msra.mxu0 %v3926_v4 }
 0x79a   :  { %3634 = vmatprep.subr.mxu0 %v3853_v2 }
 0x79b   :  { %3635 = vmatpush3.msra.mxu0 %v3941_v6 }
 0x79c   :  { %3636 = vmatprep.subr.mxu0 %v3853_v2 }
 0x79d   :  { %3637 = vmatpush3.msra.mxu0 %v3957_v8 }
 0x79e   :  { %3639 = vmatmul.mubr.msk.f32.vlgmr.msra.gmra.mxu0 %vm126_vm1, %v3110_v37  ;;  %3652 = vmatprep.subr.mxu0 %v3853_v2 }
 0x79f   :  { %3653 = vmatpush3.msra.mxu0 %v3999_v13  ;;  %3660 = vmatprep.mubr.msk.f32.mxu0 %vm3854_vm2, %v3853_v2 }
 0x7a0   :  { %3654 = vmatprep.subr.mxu0 %v3853_v2 }
 0x7a1   :  { %3655 = vmatpush3.msra.mxu0 %v4004_v14 }
 0x7a2   :  { %3656 = vmatprep.subr.mxu0 %v3853_v2 }
 0x7a3   :  { %3657 = vmatpush3.msra.mxu0 %v4020_v16 }
 0x7a4   :  { %3658 = vmatprep.subr.mxu0 %v3853_v2 }
 0x7a5   :  { %3659 = vmatpush3.msra.mxu0 %v4029_v17 }
 0x7a6   :  { %3674 = vmatprep.subr.mxu0 %v3853_v2 }
 0x856   :  { %v1918_v38 = vpop.f32.mrf.mxu0  ;;  %v2136_v39 = vpop.f32.mrf.mxu1 }
 0x857   :  { %v4408_v40 = vadd.f32 %v1918_v38, %v4336_v63 }
 0x858   :  { %v3618_v41 = vpop.f32.mrf.mxu0  ;;  %v3651_v42 = vpop.f32.mrf.mxu1 }
 0x859   :  { %v3141_v42 = vld [vmem:[%s4607_s7 + $0xf8] sm:$0xff] }
 0x85e   :  { %v2064_v43 = vpop.f32.mrf.mxu0 }
 0x85f   :  { %v2065_v44 = vadd.f32 %v2064_v43, %v1991_v34  ;;  %v3140_v43 = vld [vmem:[%s4607_s7 + $0xf0] sm:$0xff] }
 0x860   :  { %v3640_v45 = vpop.f32.mrf.mxu0 }
 0x861   :  { %v2068_v46 = vadd.f32 %v4048_v19, %v2065_v44  ;;  %v3139_v44 = vld [vmem:[%s4607_s7 + $0xe8] sm:$0xff]  ;;  %v3138_v45 = vld [vmem:[%s4607_s7 + $0xe0] sm:$0xff] }
 0x863   :  { %3807 = vtanh.f32 %v2068_v46 }
 0x870   :  { %v3808_v47 = vpop.eup %3807 }
 0x871   :  { %3661 = vmatmul.mubr.msk.f32.vlgmr.msra.gmra.mxu0 %vm52_vm3, %v3808_v47 }
 0x872   :  { %3675 = vmatpush3.msra.mxu0 %v3909_v0  ;;  %3682 = vmatprep.mubr.msk.f32.mxu0 %vm3854_vm2, %v3853_v2  ;;  %v3119_v0 = vld [vmem:[%s4607_s7 + $0xb8] sm:$0xff] }
 0x873   :  { %3676 = vmatprep.subr.mxu0 %v3853_v2  ;;  %3664 = vmatpush3.msra.mxu1 %v3119_v0 }
 0x874   :  { %3677 = vmatpush3.msra.mxu0 %v3921_v3  ;;  %v3118_v3 = vld [vmem:[%s4607_s7 + $0xb0] sm:$0xff]  ;;  %3665 = vmatprep.subr.mxu1 %v3853_v2 }
 0x875   :  { %3678 = vmatprep.subr.mxu0 %v3853_v2  ;;  %3666 = vmatpush3.msra.mxu1 %v3118_v3 }
 0x876   :  { %3679 = vmatpush3.msra.mxu0 %v3936_v5  ;;  %v3117_v5 = vld [vmem:[%s4607_s7 + $0xa8] sm:$0xff]  ;;  %3667 = vmatprep.subr.mxu1 %v3853_v2 }
 0x877   :  { %3680 = vmatprep.subr.mxu0 %v3853_v2  ;;  %3668 = vmatpush3.msra.mxu1 %v3117_v5 }
 0x878   :  { %3681 = vmatpush3.msra.mxu0 %v3950_v7  ;;  %3669 = vmatprep.subr.mxu1 %v3853_v2 }
 0x879   :  { %3683 = vmatmul.mubr.msk.f32.vlgmr.msra.gmra.mxu0 %vm52_vm3, %v3808_v47  ;;  %3696 = vmatprep.subr.mxu0 %v3853_v2 }
 0x87a   :  { %3697 = vmatpush3.msra.mxu0 %v3981_v10  ;;  %3704 = vmatprep.mubr.msk.f32.mxu0 %vm3854_vm2, %v3853_v2 }
 0x87b   :  { %3698 = vmatprep.subr.mxu0 %v3853_v2  ;;  %3670 = vmatpush3.msra.mxu1 %v3116_v48 }
 0x87c   :  { %3699 = vmatpush3.msra.mxu0 %v3988_v11  ;;  %3685 = vmatprep.subr.mxu1 %v3853_v2 }
 0x87d   :  { %3700 = vmatprep.subr.mxu0 %v3853_v2 }
 0x87e   :  { %3701 = vmatpush3.msra.mxu0 %v3993_v12 }
 0x87f   :  { %3702 = vmatprep.subr.mxu0 %v3853_v2 }
 0x880   :  { %3703 = vmatpush3.msra.mxu0 %v4010_v15 }
 0x881   :  { %3718 = vmatprep.subr.mxu0 %v3853_v2 }
 0x931   :  { %v2209_v49 = vpop.f32.mrf.mxu0 }
 0x932   :  { %v2210_v50 = vadd.f32 %v2209_v49, %v2136_v39  ;;  %v3830_v39 = vld [vmem:[%s4603_s3] ss:$0 sm:$0xff] }
 0x933   :  { %v3662_v51 = vpop.f32.mrf.mxu0  ;;  %v3143_v49 = vld [vmem:[%s4608_s8] ss:$0 sm:$0xff] }
 0x934   :  { %v2213_v52 = vadd.f32 %v4091_v29, %v2210_v50 }
 0x936   :  { %3809 = vtanh.f32 %v2213_v52 }
 0x939   :  { %v2362_v53 = vpop.f32.mrf.mxu0 }
 0x93b   :  { %v3684_v54 = vpop.f32.mrf.mxu0 }
 0x943   :  { %v3810_v55 = vpop.eup %3809 }
 0x944   :  { %3672 = vmatmul.mubr.msk.f32.vlgmr.msra.gmra.mxu1 %vm52_vm3, %v3810_v55  ;;  %3705 = vmatmul.mubr.msk.f32.vlgmr.msra.gmra.mxu0 %vm52_vm3, %v3810_v55 }
 0x945   :  { %3686 = vmatpush3.msk.msra.mxu1 %vm130_vm0, %v3914_v1  ;;  %3693 = vmatprep.mubr.msk.f32.mxu1 %vm3854_vm2, %v3853_v2 }
 0x946   :  { %3687 = vmatprep.subr.mxu1 %v3853_v2  ;;  %3726 = vmatprep.mubr.msk.f32.mxu0 %vm3854_vm2, %v3853_v2 }
 0x947   :  { %3688 = vmatpush3.msra.mxu1 %v3926_v4 }
 0x948   :  { %3689 = vmatprep.subr.mxu1 %v3853_v2 }
 0x949   :  { %3690 = vmatpush3.msra.mxu1 %v3941_v6 }
 0x94a   :  { %3691 = vmatprep.subr.mxu1 %v3853_v2 }
 0x94b   :  { %3692 = vmatpush3.msra.mxu1 %v3957_v8 }
 0x94c   :  { %3694 = vmatmul.mubr.msk.f32.vlgmr.msra.gmra.mxu1 %vm126_vm1, %v3121_v56  ;;  %3707 = vmatprep.subr.mxu1 %v3853_v2 }
 0x94d   :  { %3708 = vmatpush3.msra.mxu1 %v3999_v13  ;;  %3715 = vmatprep.mubr.msk.f32.mxu1 %vm3854_vm2, %v3853_v2 }
 0x94e   :  { %3709 = vmatprep.subr.mxu1 %v3853_v2 }
 0x94f   :  { %3710 = vmatpush3.msra.mxu1 %v4004_v14 }
 0x950   :  { %3711 = vmatprep.subr.mxu1 %v3853_v2 }
 0x951   :  { %3712 = vmatpush3.msra.mxu1 %v4020_v16 }
 0x952   :  { %3713 = vmatprep.subr.mxu1 %v3853_v2 }
 0x953   :  { %3714 = vmatpush3.msra.mxu1 %v4029_v17  ;;  %v3819_v17 = vld [vmem:[%s4602_s2 + $0x18] sm:$0xff] }
 0x954   :  { %3729 = vmatprep.subr.mxu1 %v3853_v2 }
 0xa04   :  { %v2289_v1 = vpop.f32.mrf.mxu1  ;;  %v2507_v4 = vpop.f32.mrf.mxu0 }
 0xa05   :  { %v4480_v6 = vadd.f32 %v2289_v1, %v4408_v40 }
 0xa06   :  { %v3673_v8 = vpop.f32.mrf.mxu1  ;;  %v3706_v13 = vpop.f32.mrf.mxu0 }
 0xa0c   :  { %v2435_v57 = vpop.f32.mrf.mxu1 }
 0xa0d   :  { %v2436_v58 = vadd.f32 %v2435_v57, %v2362_v53 }
 0xa0e   :  { %v3695_v14 = vpop.f32.mrf.mxu1 }
 0xa0f   :  { %v2439_v59 = vadd.f32 %v4048_v19, %v2436_v58  ;;  %v3821_v19 = vld [vmem:[%s4602_s2 + $0x8] sm:$0xff] }
 0xa11   :  { %3811 = vtanh.f32 %v2439_v59 }
 0xa1e   :  { %v3812_v16 = vpop.eup %3811 }
 0xa1f   :  { %3716 = vmatmul.mubr.msk.f32.vlgmr.msra.gmra.mxu1 %vm52_vm3, %v3812_v16 }
 0xa20   :  { %3730 = vmatpush3.msra.mxu1 %v3819_v17  ;;  %3737 = vmatprep.mubr.msk.f32.mxu1 %vm3854_vm2, %v3853_v2 }
 0xa21   :  { %3731 = vmatprep.subr.mxu1 %v3853_v2 }
 0xa22   :  { %3732 = vmatpush3.msra.mxu1 %v3820_v60 }
 0xa23   :  { %3733 = vmatprep.subr.mxu1 %v3853_v2 }
 0xa24   :  { %3734 = vmatpush3.msra.mxu1 %v3821_v19 }
 0xa25   :  { %3735 = vmatprep.subr.mxu1 %v3853_v2 }
 0xa26   :  { %3736 = vmatpush3.msra.mxu1 %v3950_v7  ;;  %v3130_v7 = vld [vmem:[%s4607_s7 + $0xd8] sm:$0xff] }
 0xa27   :  { %3738 = vmatmul.mubr.msk.f32.vlgmr.msra.gmra.mxu1 %vm52_vm3, %v3812_v16  ;;  %3751 = vmatprep.subr.mxu1 %v3853_v2 }
 0xa28   :  { %3752 = vmatpush3.msra.mxu1 %v3981_v10  ;;  %3759 = vmatprep.mubr.msk.f32.mxu1 %vm3854_vm2, %v3853_v2  ;;  %v3129_v10 = vld [vmem:[%s4607_s7 + $0xd0] sm:$0xff] }
 0xa29   :  { %3753 = vmatprep.subr.mxu1 %v3853_v2  ;;  %3719 = vmatpush3.msra.mxu0 %v3130_v7 }
 0xa2a   :  { %3754 = vmatpush3.msra.mxu1 %v3988_v11  ;;  %3720 = vmatprep.subr.mxu0 %v3853_v2  ;;  %v3128_v11 = vld [vmem:[%s4607_s7 + $0xc8] sm:$0xff] }
 0xa2b   :  { %3755 = vmatprep.subr.mxu1 %v3853_v2  ;;  %3721 = vmatpush3.msra.mxu0 %v3129_v10 }
 0xa2c   :  { %3756 = vmatpush3.msra.mxu1 %v3993_v12  ;;  %3722 = vmatprep.subr.mxu0 %v3853_v2  ;;  %v3127_v12 = vld [vmem:[%s4607_s7 + $0xc0] sm:$0xff]  ;;  %s3052_s7 = sshll.u32 %s3855_s30, 4  ;;  %s3053_s7 = int_to_ptr.vmem [resolvable:$true] %s3052_s7 }
 0xa2d   :  { %3757 = vmatprep.subr.mxu1 %v3853_v2  ;;  %3723 = vmatpush3.msra.mxu0 %v3128_v11  ;;  %s3831_s10 = scalar_lea.vmem %s3053_s7, 32  ;;  %p3836_p1 = scmp.lt.s32.totalorder %s3053_s7, %s3053_s7 }
 0xa2e   :  { %3758 = vmatpush3.msra.mxu1 %v4010_v15  ;;  %3724 = vmatprep.subr.mxu0 %v3853_v2  ;;  %p3832_p0 = scmp.ne.s32.totalorder %s3053_s7, %s3831_s10  ;;  %p3837_p2 = scmp.lt.s32.totalorder %s3831_s10, %s3831_s10 }
 0xa2f   :  { %3773 = vmatprep.subr.mxu1 %v3853_v2  ;;  %3725 = vmatpush3.msra.mxu0 %v3127_v12 }
 0xa30   :  { %3740 = vmatprep.subr.mxu0 %v3853_v2  ;;  %p3838_p3 = por %p3837_p2, %p3836_p1 }
 0xa32   :  { %p3839_p4 = pnand %p3838_p3, %p3832_p0 }
 0xadf   :  { %v2580_v15 = vpop.f32.mrf.mxu1 }
 0xae0   :  { %v2581_v61 = vadd.f32 %v2580_v15, %v2507_v4 }
 0xae1   :  { %v3717_v62 = vpop.f32.mrf.mxu1 }
 0xae2   :  { %v2584_v63 = vadd.f32 %v4091_v29, %v2581_v61 }
 0xae4   :  { %3813 = vtanh.f32 %v2584_v63 }
 0xae7   :  { %v2733_v9 = vpop.f32.mrf.mxu1 }
 0xae9   :  { %v3739_v18 = vpop.f32.mrf.mxu1 }
 0xaf1   :  { %v3814_v20 = vpop.eup %3813 }
 0xaf2   :  { %3727 = vmatmul.mubr.msk.f32.vlgmr.msra.gmra.mxu0 %vm52_vm3, %v3814_v20  ;;  %3760 = vmatmul.mubr.msk.f32.vlgmr.msra.gmra.mxu1 %vm52_vm3, %v3814_v20 }
 0xaf3   :  { %3741 = vmatpush3.msk.msra.mxu0 %vm130_vm0, %v3822_v21  ;;  %3748 = vmatprep.mubr.msk.f32.mxu0 %vm3854_vm2, %v3853_v2 }
 0xaf4   :  { %3742 = vmatprep.subr.mxu0 %v3853_v2  ;;  %3781 = vmatprep.mubr.msk.f32.mxu1 %vm3854_vm2, %v3853_v2 }
 0xaf5   :  { %3743 = vmatpush3.msra.mxu0 %v3823_v22  ;;  %3774 = vmatpush3.msra.mxu1 %v3141_v42 }
 0xaf6   :  { %3744 = vmatprep.subr.mxu0 %v3853_v2  ;;  %3775 = vmatprep.subr.mxu1 %v3853_v2 }
 0xaf7   :  { %3745 = vmatpush3.msra.mxu0 %v3824_v23  ;;  %3776 = vmatpush3.msra.mxu1 %v3140_v43 }
 0xaf8   :  { %3746 = vmatprep.subr.mxu0 %v3853_v2  ;;  %3777 = vmatprep.subr.mxu1 %v3853_v2 }
 0xaf9   :  { %3747 = vmatpush3.msra.mxu0 %v3825_v25  ;;  %3778 = vmatpush3.msra.mxu1 %v3139_v44 }
 0xafa   :  { %3749 = vmatmul.mubr.msk.f32.vlgmr.msra.gmra.mxu0 %vm126_vm1, %v3132_v24  ;;  %3762 = vmatprep.subr.mxu0 %v3853_v2 }
 0xafb   :  { %3763 = vmatpush3.msra.mxu0 %v3826_v26  ;;  %3770 = vmatprep.mubr.msk.f32.mxu0 %vm3854_vm2, %v3853_v2 }
 0xafc   :  { %3764 = vmatprep.subr.mxu0 %v3853_v2  ;;  %3779 = vmatprep.subr.mxu1 %v3853_v2 }
 0xafd   :  { %3765 = vmatpush3.msra.mxu0 %v3827_v27  ;;  %3780 = vmatpush3.msra.mxu1 %v3138_v45 }
 0xafe   :  { %3766 = vmatprep.subr.mxu0 %v3853_v2 }
 0xaff   :  { %3767 = vmatpush3.msra.mxu0 %v3828_v28 }
 0xb00   :  { %3768 = vmatprep.subr.mxu0 %v3853_v2 }
 0xb01   :  { %3769 = vmatpush3.msra.mxu0 %v3829_v30 }
 0xbb2   :  { %v2660_v31 = vpop.f32.mrf.mxu0  ;;  %v2878_v32 = vpop.f32.mrf.mxu1 }
 0xbb3   :  { %v2664_v33 = vadd.f32 %v2660_v31, %v4480_v6 }
 0xbb4   :  { %v3728_v34 = vpop.f32.mrf.mxu0  ;;  %v3761_v35 = vpop.f32.mrf.mxu1 }
 0xbba   :  { %v2806_v36 = vpop.f32.mrf.mxu0 }
 0xbbb   :  { %v2807_v37 = vadd.f32 %v2806_v36, %v2733_v9 }
 0xbbc   :  { %v3750_v38 = vpop.f32.mrf.mxu0 }
 0xbbd   :  { %v2810_v40 = vadd.f32 %v3830_v39, %v2807_v37 }
 0xbbf   :  { %3815 = vtanh.f32 %v2810_v40 }
 0xbcc   :  { %v3816_v41 = vpop.eup %3815 }
 0xbcd   :  { %3771 = vmatmul.mubr.msk.f32.vlgmr.msra.gmra.mxu0 %vm52_vm3, %v3816_v41 }
 0xc8d   :  { %v2951_v46 = vpop.f32.mrf.mxu0 }
 0xc8e   :  { %v2952_v47 = vadd.f32 %v2951_v46, %v2878_v32 }
 0xc8f   :  { %v3772_v0 = vpop.f32.mrf.mxu0 }
 0xc90   :  { %v2955_v3 = vadd.f32 %v4091_v29, %v2952_v47 }
 0xc92   :  { %3817 = vtanh.f32 %v2955_v3 }
 0xc9f   :  { %v3818_v5 = vpop.eup %3817 }
 0xca0   :  { %3782 = vmatmul.mubr.msk.f32.vlgmr.msra.gmra.mxu1 %vm52_vm3, %v3818_v5 }
 0xd60   :  { %v3031_v48 = vpop.f32.mrf.mxu1 }
 0xd61   :  { %v3035_v50 = vadd.f32 %v3031_v48, %v2664_v33 }
 0xd62   :  { %v3783_v51 = vpop.f32.mrf.mxu1 }
 0xd63   :  { %v3043_v2 = vadd.f32 %v3143_v49, %v3035_v50 }
 0xd65   :  { %3045 = vst.msk [vmem:[#allocation2] sm:$0x3] %vm3044_vm4, %v3043_v2 }
 0xd66   :  { %3842 = shalt.err (!%p3839_p4)
}
 0xd67   :  { %3055 = dma.vmem_to_hbm [thread:$0]  %s3053_s7, 32, %s4609_s9, [#allocation3]  }
 0xd68   :  { %3851 = dma.done.wait [#allocation3], 32  }
 0xd69   :  { %3852 = vsyncadd [#allocation3], 4294967264 }
 0xd6a   :  { %3059 = vsyncpa [#allocation3], 1 }

</bundles_post_ra>
